<compile_context>
chip_gen: v6e
topology: v6e:2x2x1
jax: 0.10.0
libtpu: 0.0.40
codegen_flags: <defaults>
</compile_context>

<pallas_src>
from functools import partial

import jax
import jax.numpy as jnp
from jax.experimental import pallas as pl
from jax.experimental.pallas import tpu as pltpu


# 3x3 tap offsets, kh-major then kw (matches the flattened weight layout).
_TAPS = tuple((dh, dw) for dh in (-1, 0, 1) for dw in (-1, 0, 1))
_LAYERS = ("conv1", "relu1", "conv2")
_CPAD = 8   # channels padded to one sublane tile


# -----------------------------------------------------------------------------
# Fused kernel: conv1 (3x3 SAME) -> ReLU -> conv2 (3x3 SAME); whole batch,
# one grid step.
# -----------------------------------------------------------------------------
def _fused_cnn_kernel(x_ref, w1_ref, b1_ref, w2_ref, b2_ref, m_ref, o_ref, *,
                      W, L, top):
    """Refs (single step, batch folded onto lanes; L = N*H*W):
      x_ref : (8, L)    input; channels on sublanes (zero-padded 4->8)
      w1_ref: (8, 72)   conv1 weights, column = (kh*3 + kw)*8 + cin
      b1_ref: (8, 1)    conv1 bias
      w2_ref: (8, 72)   conv2 weights
      b2_ref: (8, 1)    conv2 bias
      m_ref : (9, L)    per-tap border masks (1.0 = in-bounds), precomputed
      o_ref : (8, L)    captured layer output (lane-dense)
    """

    def conv_patches(z):
        # im2col as a value: for each 3x3 tap, shift the lane-flattened batch
        # with a circular roll and zero every out-of-image lane (which is also
        # exactly where the roll wrapped across an image / the global end).
        tiles = []
        for t, (dh, dw) in enumerate(_TAPS):
            s = dh * W + dw
            zs = z if s == 0 else pltpu.roll(z, shift=(-s) % L, axis=1)
            tiles.append(zs * m_ref[pl.ds(t, 1), :])     # (8,L) * (1,L)
        return jnp.concatenate(tiles, axis=0)            # (72, L)

    x = x_ref[...]

    # ---- conv1: single (8,72)@(72,L) MXU matmul ----
    h = jnp.dot(w1_ref[...], conv_patches(x),
                preferred_element_type=jnp.float32) + b1_ref[...]
    if top == "conv1":
        o_ref[...] = h
        return

    # ---- relu1: fused VPU epilogue ----
    h = jnp.maximum(h, 0.0)
    if top == "relu1":
        o_ref[...] = h
        return

    # ---- conv2: intermediate never leaves VMEM ----
    o_ref[...] = jnp.dot(w2_ref[...], conv_patches(h),
                         preferred_element_type=jnp.float32) + b2_ref[...]


# -----------------------------------------------------------------------------
# Wrappers
# -----------------------------------------------------------------------------
def _flatten_conv3x3_weights(w_hwio, cin_pad=_CPAD):
    """(3, 3, cin, cout) HWIO -> (cout, 9 * cin_pad); column order matches the
    kernel's im2col rows: (kh*3 + kw) * cin_pad + cin (padded cin cols are 0)."""
    kh, kw, cin, cout = w_hwio.shape
    w = jnp.pad(w_hwio, ((0, 0), (0, 0), (0, cin_pad - cin), (0, 0)))
    return jnp.transpose(w, (3, 0, 1, 2)).reshape(cout, kh * kw * cin_pad)


def _border_masks(N, H, W):
    """(9, N*H*W) float32 per-tap validity masks.  Depends only on static
    shapes, so XLA constant-folds it; the kernel just multiplies."""
    HW = H * W
    pos = jnp.arange(N * HW, dtype=jnp.int32)
    q = pos % HW                      # per-image local position
    hh = q // W
    ww = q % W
    rows = []
    for dh, dw in _TAPS:
        valid = ((hh + dh >= 0) & (hh + dh < H)
                 & (ww + dw >= 0) & (ww + dw < W))
        rows.append(valid.astype(jnp.float32))
    return jnp.stack(rows, axis=0)


def _fused_subnetwork_call(x2, w1f, b1, w2f, b2, masks, *, W, top):
    L = x2.shape[1]
    cout = w2f.shape[0]
    kernel = partial(_fused_cnn_kernel, W=W, L=L, top=top)
    return pl.pallas_call(
        kernel,
        out_shape=jax.ShapeDtypeStruct((cout, L), jnp.float32),
        grid=(1,),                                   # whole batch in one step
        in_specs=[
            pl.BlockSpec(x2.shape, lambda i: (0, 0)),
            pl.BlockSpec(w1f.shape, lambda i: (0, 0)),
            pl.BlockSpec(b1.shape, lambda i: (0, 0)),
            pl.BlockSpec(w2f.shape, lambda i: (0, 0)),
            pl.BlockSpec(b2.shape, lambda i: (0, 0)),
            pl.BlockSpec(masks.shape, lambda i: (0, 0)),
        ],
        out_specs=pl.BlockSpec((cout, L), lambda i: (0, 0)),
        compiler_params=pltpu.CompilerParams(
            dimension_semantics=("arbitrary",)),
    )(x2, w1f, b1, w2f, b2, masks)


def make_model_params():
    """Deterministic param init (shapes implied by the synthetic model)."""
    k = jax.random.PRNGKey(0)
    k1, k2, k3, k4 = jax.random.split(k, 4)
    return {
        "conv1": {
            "w": 0.1 * jax.random.normal(k1, (3, 3, 4, 8), jnp.float32),   # HWIO
            "b": 0.1 * jax.random.normal(k2, (8,), jnp.float32),
        },
        "conv2": {
            "w": 0.1 * jax.random.normal(k3, (3, 3, 8, 8), jnp.float32),   # HWIO
            "b": 0.1 * jax.random.normal(k4, (8,), jnp.float32),
        },
    }


@partial(jax.jit, static_argnames=("top_layer",))
def subnetwork_forward(x_nchw, params, top_layer="conv2"):
    """Equivalent of Subnetwork.forward: run original_model and return the
    output of the module named `top_layer` (as a forward hook would capture).
    Runs as ONE fused pallas_call; layers past `top_layer` are never computed."""
    assert top_layer in _LAYERS, (
        f"the module named '{top_layer}' does not exist.")
    N, C, H, W = x_nchw.shape
    assert C <= _CPAD
    L = N * H * W
    # NCHW -> (C, N*H*W): channels on sublanes, batch folded onto lanes.
    # Tiny transpose/pad in XLA; zero-pads channels to 8 for aligned sublanes.
    x2 = jnp.transpose(x_nchw, (1, 0, 2, 3)).reshape(C, L).astype(jnp.float32)
    x2 = jnp.pad(x2, ((0, _CPAD - C), (0, 0)))
    w1f = _flatten_conv3x3_weights(params["conv1"]["w"])
    b1 = params["conv1"]["b"].reshape(-1, 1).astype(jnp.float32)
    w2f = _flatten_conv3x3_weights(params["conv2"]["w"])
    b2 = params["conv2"]["b"].reshape(-1, 1).astype(jnp.float32)
    masks = _border_masks(N, H, W)                    # constant-folded by XLA
    out2 = _fused_subnetwork_call(x2, w1f, b1, w2f, b2, masks,
                                  W=W, top=top_layer)
    # (Cout, N*H*W) -> NCHW (tiny transpose in XLA).
    return jnp.transpose(out2.reshape(-1, N, H, W), (1, 0, 2, 3))


# -----------------------------------------------------------------------------
# Main
# -----------------------------------------------------------------------------
if __name__ == "__main__":
    key = jax.random.PRNGKey(0)
    x = jax.random.normal(key, (2, 4, 16, 16), jnp.float32)   # NCHW
    params = make_model_params()

    out = subnetwork_forward(x, params, top_layer="conv2")
    out = jax.block_until_ready(out)
    assert out.shape == (2, 8, 16, 16), out.shape

    # Pure-JAX reference (conv1 -> relu -> conv2), NCHW throughout.
    def ref_conv(z, w, b):
        y = jax.lax.conv_general_dilated(
            z, w, window_strides=(1, 1), padding="SAME",
            dimension_numbers=("NCHW", "HWIO", "NCHW"))
        return y + b[None, :, None, None]

    r1 = ref_conv(x, params["conv1"]["w"], params["conv1"]["b"])
    rr = jnp.maximum(r1, 0.0)
    r2 = ref_conv(rr, params["conv2"]["w"], params["conv2"]["b"])

    assert jnp.allclose(out, r2, atol=1e-4, rtol=1e-4), float(
        jnp.max(jnp.abs(out - r2)))

    # Also exercise the other captured-layer paths (early-exit inside kernel).
    o1 = jax.block_until_ready(subnetwork_forward(x, params, top_layer="conv1"))
    assert jnp.allclose(o1, r1, atol=1e-4, rtol=1e-4), float(
        jnp.max(jnp.abs(o1 - r1)))
    oR = jax.block_until_ready(subnetwork_forward(x, params, top_layer="relu1"))
    assert jnp.allclose(oR, rr, atol=1e-4, rtol=1e-4), float(
        jnp.max(jnp.abs(oR - rr)))

    print("KERNEL_OK")
</pallas_src>

<mosaic_0001>
module attributes {stable_mosaic.version = 11 : i64} {
  func.func @_fused_cnn_kernel(%arg0: i32, %arg1: memref<8x512xf32, #tpu.memory_space<vmem>>, %arg2: memref<8x72xf32, #tpu.memory_space<vmem>>, %arg3: memref<8x1xf32, #tpu.memory_space<vmem>>, %arg4: memref<8x72xf32, #tpu.memory_space<vmem>>, %arg5: memref<8x1xf32, #tpu.memory_space<vmem>>, %arg6: memref<9x512xf32, #tpu.memory_space<vmem>>, %arg7: memref<8x512xf32, #tpu.memory_space<vmem>>) attributes {dimension_semantics = [#tpu.dimension_semantics<arbitrary>], iteration_bounds = array<i64: 1>, scalar_prefetch = 0 : i64, scratch_operands = 0 : i64, tpu.core_type = #tpu.core_type<tc>, window_params = [{pipeline_mode = #tpu.pipeline_mode<synchronous>, transform_indices = @transform_0, window_bounds = array<i64: 8, 512>}, {pipeline_mode = #tpu.pipeline_mode<synchronous>, transform_indices = @transform_1, window_bounds = array<i64: 8, 72>}, {pipeline_mode = #tpu.pipeline_mode<synchronous>, transform_indices = @transform_2, window_bounds = array<i64: 8, 1>}, {pipeline_mode = #tpu.pipeline_mode<synchronous>, transform_indices = @transform_3, window_bounds = array<i64: 8, 72>}, {pipeline_mode = #tpu.pipeline_mode<synchronous>, transform_indices = @transform_4, window_bounds = array<i64: 8, 1>}, {pipeline_mode = #tpu.pipeline_mode<synchronous>, transform_indices = @transform_5, window_bounds = array<i64: 9, 512>}, {pipeline_mode = #tpu.pipeline_mode<synchronous>, transform_indices = @transform_6, window_bounds = array<i64: 8, 512>}]} {
    %c0 = arith.constant 0 : index
    %c0_0 = arith.constant 0 : index
    %0 = vector.load %arg1[%c0, %c0_0] : memref<8x512xf32, #tpu.memory_space<vmem>>, vector<8x512xf32>
    %c0_1 = arith.constant 0 : index
    %c0_2 = arith.constant 0 : index
    %1 = vector.load %arg2[%c0_1, %c0_2] : memref<8x72xf32, #tpu.memory_space<vmem>>, vector<8x72xf32>
    %c17_i32 = arith.constant 17 : i32
    %2 = tpu.dynamic_rotate %0 by %c17_i32 dim 1 : vector<8x512xf32>, i32 -> vector<8x512xf32>
    %c0_3 = arith.constant 0 : index
    %c0_4 = arith.constant 0 : index
    %3 = vector.load %arg6[%c0_3, %c0_4] : memref<9x512xf32, #tpu.memory_space<vmem>>, vector<1x512xf32>
    %4 = vector.broadcast %3 : vector<1x512xf32> to vector<8x512xf32>
    %5 = arith.mulf %2, %4 : vector<8x512xf32>
    %c16_i32 = arith.constant 16 : i32
    %6 = tpu.dynamic_rotate %0 by %c16_i32 dim 1 : vector<8x512xf32>, i32 -> vector<8x512xf32>
    %c1 = arith.constant 1 : index
    %c0_5 = arith.constant 0 : index
    %7 = vector.load %arg6[%c1, %c0_5] : memref<9x512xf32, #tpu.memory_space<vmem>>, vector<1x512xf32>
    %8 = vector.broadcast %7 : vector<1x512xf32> to vector<8x512xf32>
    %9 = arith.mulf %6, %8 : vector<8x512xf32>
    %c15_i32 = arith.constant 15 : i32
    %10 = tpu.dynamic_rotate %0 by %c15_i32 dim 1 : vector<8x512xf32>, i32 -> vector<8x512xf32>
    %c2 = arith.constant 2 : index
    %c0_6 = arith.constant 0 : index
    %11 = vector.load %arg6[%c2, %c0_6] : memref<9x512xf32, #tpu.memory_space<vmem>>, vector<1x512xf32>
    %12 = vector.broadcast %11 : vector<1x512xf32> to vector<8x512xf32>
    %13 = arith.mulf %10, %12 : vector<8x512xf32>
    %c1_i32 = arith.constant 1 : i32
    %14 = tpu.dynamic_rotate %0 by %c1_i32 dim 1 : vector<8x512xf32>, i32 -> vector<8x512xf32>
    %c3 = arith.constant 3 : index
    %c0_7 = arith.constant 0 : index
    %15 = vector.load %arg6[%c3, %c0_7] : memref<9x512xf32, #tpu.memory_space<vmem>>, vector<1x512xf32>
    %16 = vector.broadcast %15 : vector<1x512xf32> to vector<8x512xf32>
    %17 = arith.mulf %14, %16 : vector<8x512xf32>
    %c4 = arith.constant 4 : index
    %c0_8 = arith.constant 0 : index
    %18 = vector.load %arg6[%c4, %c0_8] : memref<9x512xf32, #tpu.memory_space<vmem>>, vector<1x512xf32>
    %19 = vector.broadcast %18 : vector<1x512xf32> to vector<8x512xf32>
    %20 = arith.mulf %0, %19 : vector<8x512xf32>
    %c511_i32 = arith.constant 511 : i32
    %21 = tpu.dynamic_rotate %0 by %c511_i32 dim 1 : vector<8x512xf32>, i32 -> vector<8x512xf32>
    %c5 = arith.constant 5 : index
    %c0_9 = arith.constant 0 : index
    %22 = vector.load %arg6[%c5, %c0_9] : memref<9x512xf32, #tpu.memory_space<vmem>>, vector<1x512xf32>
    %23 = vector.broadcast %22 : vector<1x512xf32> to vector<8x512xf32>
    %24 = arith.mulf %21, %23 : vector<8x512xf32>
    %c497_i32 = arith.constant 497 : i32
    %25 = tpu.dynamic_rotate %0 by %c497_i32 dim 1 : vector<8x512xf32>, i32 -> vector<8x512xf32>
    %c6 = arith.constant 6 : index
    %c0_10 = arith.constant 0 : index
    %26 = vector.load %arg6[%c6, %c0_10] : memref<9x512xf32, #tpu.memory_space<vmem>>, vector<1x512xf32>
    %27 = vector.broadcast %26 : vector<1x512xf32> to vector<8x512xf32>
    %28 = arith.mulf %25, %27 : vector<8x512xf32>
    %c496_i32 = arith.constant 496 : i32
    %29 = tpu.dynamic_rotate %0 by %c496_i32 dim 1 : vector<8x512xf32>, i32 -> vector<8x512xf32>
    %c7 = arith.constant 7 : index
    %c0_11 = arith.constant 0 : index
    %30 = vector.load %arg6[%c7, %c0_11] : memref<9x512xf32, #tpu.memory_space<vmem>>, vector<1x512xf32>
    %31 = vector.broadcast %30 : vector<1x512xf32> to vector<8x512xf32>
    %32 = arith.mulf %29, %31 : vector<8x512xf32>
    %c495_i32 = arith.constant 495 : i32
    %33 = tpu.dynamic_rotate %0 by %c495_i32 dim 1 : vector<8x512xf32>, i32 -> vector<8x512xf32>
    %c8 = arith.constant 8 : index
    %c0_12 = arith.constant 0 : index
    %34 = vector.load %arg6[%c8, %c0_12] : memref<9x512xf32, #tpu.memory_space<vmem>>, vector<1x512xf32>
    %35 = vector.broadcast %34 : vector<1x512xf32> to vector<8x512xf32>
    %36 = arith.mulf %33, %35 : vector<8x512xf32>
    %37 = tpu.concatenate %5, %9, %13, %17, %20, %24, %28, %32, %36 in 0 : vector<8x512xf32>, vector<8x512xf32>, vector<8x512xf32>, vector<8x512xf32>, vector<8x512xf32>, vector<8x512xf32>, vector<8x512xf32>, vector<8x512xf32>, vector<8x512xf32> -> vector<72x512xf32>
    %cst = arith.constant dense<0.000000e+00> : vector<8x512xf32>
    %38 = tpu.matmul %1, %37, %cst {dimension_numbers = #tpu.dot_dimension_numbers<[1], [0], [0], [1], [0, 0, 1, 1], [], []>} : vector<8x72xf32>, vector<72x512xf32>, vector<8x512xf32> -> vector<8x512xf32>
    %c0_13 = arith.constant 0 : index
    %c0_14 = arith.constant 0 : index
    %39 = vector.load %arg3[%c0_13, %c0_14] : memref<8x1xf32, #tpu.memory_space<vmem>>, vector<8x1xf32>
    %40 = vector.broadcast %39 : vector<8x1xf32> to vector<8x512xf32>
    %41 = arith.addf %38, %40 : vector<8x512xf32>
    %cst_15 = arith.constant 0.000000e+00 : f32
    %42 = vector.broadcast %cst_15 : f32 to vector<8x512xf32>
    %43 = arith.maximumf %41, %42 : vector<8x512xf32>
    %c0_16 = arith.constant 0 : index
    %c0_17 = arith.constant 0 : index
    %44 = vector.load %arg4[%c0_16, %c0_17] : memref<8x72xf32, #tpu.memory_space<vmem>>, vector<8x72xf32>
    %c17_i32_18 = arith.constant 17 : i32
    %45 = tpu.dynamic_rotate %43 by %c17_i32_18 dim 1 : vector<8x512xf32>, i32 -> vector<8x512xf32>
    %c0_19 = arith.constant 0 : index
    %c0_20 = arith.constant 0 : index
    %46 = vector.load %arg6[%c0_19, %c0_20] : memref<9x512xf32, #tpu.memory_space<vmem>>, vector<1x512xf32>
    %47 = vector.broadcast %46 : vector<1x512xf32> to vector<8x512xf32>
    %48 = arith.mulf %45, %47 : vector<8x512xf32>
    %c16_i32_21 = arith.constant 16 : i32
    %49 = tpu.dynamic_rotate %43 by %c16_i32_21 dim 1 : vector<8x512xf32>, i32 -> vector<8x512xf32>
    %c1_22 = arith.constant 1 : index
    %c0_23 = arith.constant 0 : index
    %50 = vector.load %arg6[%c1_22, %c0_23] : memref<9x512xf32, #tpu.memory_space<vmem>>, vector<1x512xf32>
    %51 = vector.broadcast %50 : vector<1x512xf32> to vector<8x512xf32>
    %52 = arith.mulf %49, %51 : vector<8x512xf32>
    %c15_i32_24 = arith.constant 15 : i32
    %53 = tpu.dynamic_rotate %43 by %c15_i32_24 dim 1 : vector<8x512xf32>, i32 -> vector<8x512xf32>
    %c2_25 = arith.constant 2 : index
    %c0_26 = arith.constant 0 : index
    %54 = vector.load %arg6[%c2_25, %c0_26] : memref<9x512xf32, #tpu.memory_space<vmem>>, vector<1x512xf32>
    %55 = vector.broadcast %54 : vector<1x512xf32> to vector<8x512xf32>
    %56 = arith.mulf %53, %55 : vector<8x512xf32>
    %c1_i32_27 = arith.constant 1 : i32
    %57 = tpu.dynamic_rotate %43 by %c1_i32_27 dim 1 : vector<8x512xf32>, i32 -> vector<8x512xf32>
    %c3_28 = arith.constant 3 : index
    %c0_29 = arith.constant 0 : index
    %58 = vector.load %arg6[%c3_28, %c0_29] : memref<9x512xf32, #tpu.memory_space<vmem>>, vector<1x512xf32>
    %59 = vector.broadcast %58 : vector<1x512xf32> to vector<8x512xf32>
    %60 = arith.mulf %57, %59 : vector<8x512xf32>
    %c4_30 = arith.constant 4 : index
    %c0_31 = arith.constant 0 : index
    %61 = vector.load %arg6[%c4_30, %c0_31] : memref<9x512xf32, #tpu.memory_space<vmem>>, vector<1x512xf32>
    %62 = vector.broadcast %61 : vector<1x512xf32> to vector<8x512xf32>
    %63 = arith.mulf %43, %62 : vector<8x512xf32>
    %c511_i32_32 = arith.constant 511 : i32
    %64 = tpu.dynamic_rotate %43 by %c511_i32_32 dim 1 : vector<8x512xf32>, i32 -> vector<8x512xf32>
    %c5_33 = arith.constant 5 : index
    %c0_34 = arith.constant 0 : index
    %65 = vector.load %arg6[%c5_33, %c0_34] : memref<9x512xf32, #tpu.memory_space<vmem>>, vector<1x512xf32>
    %66 = vector.broadcast %65 : vector<1x512xf32> to vector<8x512xf32>
    %67 = arith.mulf %64, %66 : vector<8x512xf32>
    %c497_i32_35 = arith.constant 497 : i32
    %68 = tpu.dynamic_rotate %43 by %c497_i32_35 dim 1 : vector<8x512xf32>, i32 -> vector<8x512xf32>
    %c6_36 = arith.constant 6 : index
    %c0_37 = arith.constant 0 : index
    %69 = vector.load %arg6[%c6_36, %c0_37] : memref<9x512xf32, #tpu.memory_space<vmem>>, vector<1x512xf32>
    %70 = vector.broadcast %69 : vector<1x512xf32> to vector<8x512xf32>
    %71 = arith.mulf %68, %70 : vector<8x512xf32>
    %c496_i32_38 = arith.constant 496 : i32
    %72 = tpu.dynamic_rotate %43 by %c496_i32_38 dim 1 : vector<8x512xf32>, i32 -> vector<8x512xf32>
    %c7_39 = arith.constant 7 : index
    %c0_40 = arith.constant 0 : index
    %73 = vector.load %arg6[%c7_39, %c0_40] : memref<9x512xf32, #tpu.memory_space<vmem>>, vector<1x512xf32>
    %74 = vector.broadcast %73 : vector<1x512xf32> to vector<8x512xf32>
    %75 = arith.mulf %72, %74 : vector<8x512xf32>
    %c495_i32_41 = arith.constant 495 : i32
    %76 = tpu.dynamic_rotate %43 by %c495_i32_41 dim 1 : vector<8x512xf32>, i32 -> vector<8x512xf32>
    %c8_42 = arith.constant 8 : index
    %c0_43 = arith.constant 0 : index
    %77 = vector.load %arg6[%c8_42, %c0_43] : memref<9x512xf32, #tpu.memory_space<vmem>>, vector<1x512xf32>
    %78 = vector.broadcast %77 : vector<1x512xf32> to vector<8x512xf32>
    %79 = arith.mulf %76, %78 : vector<8x512xf32>
    %80 = tpu.concatenate %48, %52, %56, %60, %63, %67, %71, %75, %79 in 0 : vector<8x512xf32>, vector<8x512xf32>, vector<8x512xf32>, vector<8x512xf32>, vector<8x512xf32>, vector<8x512xf32>, vector<8x512xf32>, vector<8x512xf32>, vector<8x512xf32> -> vector<72x512xf32>
    %cst_44 = arith.constant dense<0.000000e+00> : vector<8x512xf32>
    %81 = tpu.matmul %44, %80, %cst_44 {dimension_numbers = #tpu.dot_dimension_numbers<[1], [0], [0], [1], [0, 0, 1, 1], [], []>} : vector<8x72xf32>, vector<72x512xf32>, vector<8x512xf32> -> vector<8x512xf32>
    %c0_45 = arith.constant 0 : index
    %c0_46 = arith.constant 0 : index
    %82 = vector.load %arg5[%c0_45, %c0_46] : memref<8x1xf32, #tpu.memory_space<vmem>>, vector<8x1xf32>
    %83 = vector.broadcast %82 : vector<8x1xf32> to vector<8x512xf32>
    %84 = arith.addf %81, %83 : vector<8x512xf32>
    %c0_47 = arith.constant 0 : index
    %c0_48 = arith.constant 0 : index
    %85 = vector.load %arg7[%c0_47, %c0_48] : memref<8x512xf32, #tpu.memory_space<vmem>>, vector<8x512xf32>
    tpu.vector_store %arg7[%c0_47, %c0_48], %84 {strides = array<i32>} : memref<8x512xf32, #tpu.memory_space<vmem>>, vector<8x512xf32>,
    return
  }
  func.func @transform_0(%arg0: i32) -> (i32, i32) {
    %c0_i32 = arith.constant 0 : i32
    %c0_i32_0 = arith.constant 0 : i32
    %c0_i32_1 = arith.constant 0 : i32
    return %c0_i32, %c0_i32_0 : i32, i32
  }
  func.func @transform_1(%arg0: i32) -> (i32, i32) {
    %c0_i32 = arith.constant 0 : i32
    %c0_i32_0 = arith.constant 0 : i32
    %c0_i32_1 = arith.constant 0 : i32
    return %c0_i32, %c0_i32_0 : i32, i32
  }
  func.func @transform_2(%arg0: i32) -> (i32, i32) {
    %c0_i32 = arith.constant 0 : i32
    %c0_i32_0 = arith.constant 0 : i32
    %c0_i32_1 = arith.constant 0 : i32
    return %c0_i32, %c0_i32_0 : i32, i32
  }
  func.func @transform_3(%arg0: i32) -> (i32, i32) {
    %c0_i32 = arith.constant 0 : i32
    %c0_i32_0 = arith.constant 0 : i32
    %c0_i32_1 = arith.constant 0 : i32
    return %c0_i32, %c0_i32_0 : i32, i32
  }
  func.func @transform_4(%arg0: i32) -> (i32, i32) {
    %c0_i32 = arith.constant 0 : i32
    %c0_i32_0 = arith.constant 0 : i32
    %c0_i32_1 = arith.constant 0 : i32
    return %c0_i32, %c0_i32_0 : i32, i32
  }
  func.func @transform_5(%arg0: i32) -> (i32, i32) {
    %c0_i32 = arith.constant 0 : i32
    %c0_i32_0 = arith.constant 0 : i32
    %c0_i32_1 = arith.constant 0 : i32
    return %c0_i32, %c0_i32_0 : i32, i32
  }
  func.func @transform_6(%arg0: i32) -> (i32, i32) {
    %c0_i32 = arith.constant 0 : i32
    %c0_i32_0 = arith.constant 0 : i32
    %c0_i32_1 = arith.constant 0 : i32
    return %c0_i32, %c0_i32_0 : i32, i32
  }
}

</mosaic_0001>

<bundles_post_ra>
// kernel: subnetwork_forward.1
= control target key start
LH: loop header
LB: loop body
LE: loop exit
PB: predicated region body
PF: predicated region fallthrough
CT: control target
= control target key end

     0   :  { %s847_s25 = smov 111   ;;  %s848_s30 = smov 112   ;;  %v854_v4 = vmov 0.0   ;;  %v855_v5 = vmov 0   ;;  %v36_v7 = vlaneseq  ;;  %vm382_vm8 = vcmask 588800   ;;  %s1441_s0 = inlined_call_operand.vmem [shape: f32[8,512], index: 0, kind: input, shape index: {}]   ;;  %s1442_s2 = inlined_call_operand.vmem [shape: f32[8,1], index: 2, kind: input, shape index: {}]   ;;  %s1443_s5 = inlined_call_operand.vmem [shape: f32[9,512], index: 5, kind: input, shape index: {}]   ;;  %s1444_s1 = inlined_call_operand.vmem [shape: f32[8,72], index: 1, kind: input, shape index: {}]   ;;  %s1445_s4 = inlined_call_operand.vmem [shape: f32[8,1], index: 4, kind: input, shape index: {}]   ;;  %s1446_s3 = inlined_call_operand.vmem [shape: f32[8,72], index: 3, kind: input, shape index: {}]   ;;  %s1447_s6 = inlined_call_operand.vmem [shape: f32[8,512], index: 6, kind: output, shape index: {}]  }
   0x1   :  { %v895_v0 = vld [vmem:[%s1441_s0 + $0x10] sm:$0xff]  ;;  %v900_v1 = vld [vmem:[%s1441_s0] sm:$0xff]  ;;  %v909_v2 = vld [vmem:[%s1441_s0 + $0x18] sm:$0xff]  ;;  %s850_s7 = smov 127   ;;  %s851_s8 = smov 1   ;;  %450 = vmatprep.mubr.f32.mxu0 %v854_v4  ;;  %521 = vmatprep.mubr.f32.mxu1 %v854_v4 }
   0x2   :  { %340 = vrot.lane.b32.xlu1 %v895_v0, %s847_s25  ;;  %336 = vrot.lane.b32.xlu0 %v900_v1, %s847_s25  ;;  %v914_v3 = vld [vmem:[%s1441_s0 + $0x8] sm:$0xff]  ;;  %s849_s0 = smov 113   ;;  %s852_s9 = smov 15   ;;  %v376_v6 = vld [vmem:[%s1442_s2] sm:$0xff]  ;;  %v46_v8 = vshrl.u32 %v36_v7, 7  ;;  %v981_v9 = vand.u32 127, %v36_v7 }
   0x3   :  { %s853_s10 = smov 16   ;;  %846 = vset.pattern.permute.xlu0 %v855_v5  ;;  %s856_s11 = smov 17   ;;  %v831_v14 = vld [vmem:[%s1443_s5 + $0x20] ss:$8 sm:$0xf] }
   0x4   :  { %v983_v10 = vsub.s32 1, %v46_v8  ;;  %v985_v11 = vsub.s32 3, %v46_v8  ;;  %v987_v12 = vsub.s32 0, %v46_v8  ;;  %v989_v13 = vsub.s32 2, %v46_v8 }
   0x5   :  { %vm344_vm0 = vcmp.lt.s32.totalorder %v981_v9, 111  ;;  %v830_v32 = vld [vmem:[%s1443_s5 + $0x7] ss:$8 sm:$0xf]  ;;  %vm304_vm1 = vcmp.lt.s32.totalorder %v981_v9, 112  ;;  %vm264_vm2 = vcmp.lt.s32.totalorder %v981_v9, 113 }
   0x6   :  { %342 = vrot.lane.b32.xlu1 %v909_v2, %s847_s25  ;;  %338 = vrot.lane.b32.xlu0 %v914_v3, %s847_s25  ;;  %v996_v17 = vrot.slane %v831_v14, %v983_v10  ;;  %v999_v18 = vrot.slane %v831_v14, %v985_v11  ;;  %v1002_v19 = vrot.slane %v831_v14, %v987_v12  ;;  %v829_v49 = vld [vmem:[%s1443_s5 + $0x6] ss:$8 sm:$0xf]  ;;  %v827_v5 = vld [vmem:[%s1443_s5 + $0x4] ss:$8 sm:$0xf] }
   0x7   :  { %v1005_v20 = vrot.slane %v831_v14, %v989_v13  ;;  %v1024_v34 = vrot.slane %v830_v32, %v985_v11  ;;  %v1027_v35 = vrot.slane %v830_v32, %v983_v10  ;;  %v1030_v36 = vrot.slane %v830_v32, %v989_v13  ;;  %v828_v8 = vld [vmem:[%s1443_s5 + $0x5] ss:$8 sm:$0xf] }
   0x8   :  { %v1033_v37 = vrot.slane %v830_v32, %v987_v12  ;;  %v1052_v51 = vrot.slane %v829_v49, %v985_v11  ;;  %v1055_v52 = vrot.slane %v829_v49, %v983_v10  ;;  %v1058_v53 = vrot.slane %v829_v49, %v989_v13 }
   0x9   :  { %v1061_v54 = vrot.slane %v829_v49, %v987_v12  ;;  %vm224_vm3 = vcmp.lt.s32.totalorder %v981_v9, 127  ;;  %vm157_vm4 = vcmp.lt.s32.totalorder %v981_v9, 1  ;;  %vm117_vm5 = vcmp.lt.s32.totalorder %v981_v9, 15 }
   0xa   :  { %298 = vrot.lane.b32.xlu1 %v914_v3, %s848_s30  ;;  %296 = vrot.lane.b32.xlu0 %v900_v1, %s848_s30  ;;  %vm77_vm6 = vcmp.lt.s32.totalorder %v981_v9, 16  ;;  %vm38_vm7 = vcmp.lt.s32.totalorder %v981_v9, 17 }
   0xe   :  { %302 = vrot.lane.b32.xlu1 %v909_v2, %s848_s30  ;;  %300 = vrot.lane.b32.xlu0 %v895_v0, %s848_s30 }
  0x12   :  { %258 = vrot.lane.b32.xlu1 %v914_v3, %s849_s0  ;;  %256 = vrot.lane.b32.xlu0 %v900_v1, %s849_s0 }
  0x16   :  { %262 = vrot.lane.b32.xlu1 %v909_v2, %s849_s0  ;;  %260 = vrot.lane.b32.xlu0 %v895_v0, %s849_s0 }
  0x1a   :  { %218 = vrot.lane.b32.xlu1 %v914_v3, %s850_s7  ;;  %216 = vrot.lane.b32.xlu0 %v900_v1, %s850_s7 }
  0x1e   :  { %222 = vrot.lane.b32.xlu1 %v909_v2, %s850_s7  ;;  %220 = vrot.lane.b32.xlu0 %v895_v0, %s850_s7 }
  0x22   :  { %151 = vrot.lane.b32.xlu1 %v914_v3, %s851_s8  ;;  %149 = vrot.lane.b32.xlu0 %v900_v1, %s851_s8 }
  0x26   :  { %155 = vrot.lane.b32.xlu1 %v909_v2, %s851_s8  ;;  %153 = vrot.lane.b32.xlu0 %v895_v0, %s851_s8 }
  0x2a   :  { %111 = vrot.lane.b32.xlu1 %v914_v3, %s852_s9  ;;  %109 = vrot.lane.b32.xlu0 %v900_v1, %s852_s9 }
  0x2e   :  { %115 = vrot.lane.b32.xlu1 %v909_v2, %s852_s9  ;;  %113 = vrot.lane.b32.xlu0 %v895_v0, %s852_s9 }
  0x32   :  { %71 = vrot.lane.b32.xlu1 %v914_v3, %s853_s10  ;;  %69 = vrot.lane.b32.xlu0 %v900_v1, %s853_s10 }
  0x36   :  { %75 = vrot.lane.b32.xlu1 %v909_v2, %s853_s10  ;;  %73 = vrot.lane.b32.xlu0 %v895_v0, %s853_s10 }
  0x3a   :  { %30 = vrot.lane.b32.xlu1 %v914_v3, %s856_s11  ;;  %28 = vrot.lane.b32.xlu0 %v900_v1, %s856_s11 }
  0x3e   :  { %34 = vrot.lane.b32.xlu1 %v909_v2, %s856_s11  ;;  %32 = vrot.lane.b32.xlu0 %v895_v0, %s856_s11 }
  0x42   :  { %379 = vperm.xlu0 %846, %v376_v6  }
  0x74   :  { %v341_v15 = vpop.permute.xlu1 %340  ;;  %v337_v16 = vpop.permute.xlu0 %336 }
  0x78   :  { %v343_v21 = vpop.permute.xlu1 %342  ;;  %v339_v22 = vpop.permute.xlu0 %338 }
  0x79   :  { %v345_v23 = vsel %vm344_vm0, %v341_v15, %v343_v21  ;;  %v347_v24 = vsel %vm344_vm0, %v337_v16, %v339_v22  ;;  %v346_v25 = vsel %vm344_vm0, %v339_v22, %v341_v15  ;;  %v348_v26 = vsel %vm344_vm0, %v343_v21, %v337_v16  ;;  %v826_v15 = vld [vmem:[%s1443_s5 + $0x3] ss:$8 sm:$0xf] }
  0x7a   :  { %v373_v27 = vmul.f32 %v996_v17, %v346_v25  ;;  %v375_v28 = vmul.f32 %v999_v18, %v348_v26  ;;  %v372_v29 = vmul.f32 %v1002_v19, %v347_v24  ;;  %v374_v30 = vmul.f32 %v1005_v20, %v345_v23 }
  0x7b   :  { %v1086_v16 = vrot.slane %v827_v5, %v983_v10  ;;  %v1089_v21 = vrot.slane %v828_v8, %v985_v11  ;;  %v1092_v22 = vrot.slane %v828_v8, %v983_v10  ;;  %v1095_v23 = vrot.slane %v828_v8, %v989_v13 }
  0x7c   :  { %v299_v31 = vpop.permute.xlu1 %298  ;;  %400 = vmatprep.subr.mxu0 %v373_v27  ;;  %471 = vmatprep.subr.mxu1 %v375_v28  ;;  %v297_v33 = vpop.permute.xlu0 %296  ;;  %v1098_v24 = vrot.slane %v827_v5, %v985_v11  ;;  %v1101_v25 = vrot.slane %v828_v8, %v987_v12  ;;  %v1104_v26 = vrot.slane %v827_v5, %v987_v12 }
  0x7d   :  { %401 = vmatpush1.msra.mxu0 %v372_v29  ;;  %472 = vmatpush1.msra.mxu1 %v374_v30  ;;  %v307_v38 = vsel %vm304_vm1, %v297_v33, %v299_v31  ;;  %v1107_v27 = vrot.slane %v827_v5, %v989_v13  ;;  %v1136_v49 = vrot.slane %v826_v15, %v987_v12 }
  0x7e   :  { %v332_v47 = vmul.f32 %v1033_v37, %v307_v38 }
  0x80   :  { %v303_v39 = vpop.permute.xlu1 %302  ;;  %v301_v40 = vpop.permute.xlu0 %300 }
  0x81   :  { %v308_v41 = vsel %vm304_vm1, %v303_v39, %v297_v33  ;;  %v305_v42 = vsel %vm304_vm1, %v301_v40, %v303_v39  ;;  %v306_v43 = vsel %vm304_vm1, %v299_v31, %v301_v40  ;;  %v1113_v31 = vrot.slane %v826_v15, %v983_v10 }
  0x82   :  { %v335_v44 = vmul.f32 %v1024_v34, %v308_v41  ;;  %v333_v45 = vmul.f32 %v1027_v35, %v306_v43  ;;  %v334_v46 = vmul.f32 %v1030_v36, %v305_v42  ;;  %v213_v39 = vmul.f32 %v1086_v16, %v914_v3 }
  0x83   :  { %v215_v43 = vmul.f32 %v1098_v24, %v909_v2 }
  0x84   :  { %v259_v48 = vpop.permute.xlu1 %258  ;;  %402 = vmatprep.subr.mxu0 %v333_v45  ;;  %473 = vmatprep.subr.mxu1 %v335_v44  ;;  %v257_v50 = vpop.permute.xlu0 %256  ;;  %v212_v45 = vmul.f32 %v1104_v26, %v900_v1  ;;  %v1140_v1 = vrot.slane %v826_v15, %v989_v13 }
  0x85   :  { %403 = vmatpush1.msra.mxu0 %v332_v47  ;;  %474 = vmatpush1.msra.mxu1 %v334_v46  ;;  %v267_v55 = vsel %vm264_vm2, %v257_v50, %v259_v48  ;;  %v214_v46 = vmul.f32 %v1107_v27, %v895_v0  ;;  %v1143_v0 = vrot.slane %v826_v15, %v985_v11 }
  0x86   :  { %v292_v6 = vmul.f32 %v1061_v54, %v267_v55 }
  0x88   :  { %v263_v56 = vpop.permute.xlu1 %262  ;;  %v261_v57 = vpop.permute.xlu0 %260 }
  0x89   :  { %v268_v58 = vsel %vm264_vm2, %v263_v56, %v257_v50  ;;  %v265_v59 = vsel %vm264_vm2, %v261_v57, %v263_v56  ;;  %v266_v60 = vsel %vm264_vm2, %v259_v48, %v261_v57  ;;  %v825_v50 = vld [vmem:[%s1443_s5 + $0x2] ss:$8 sm:$0xf] }
  0x8a   :  { %v295_v61 = vmul.f32 %v1052_v51, %v268_v58  ;;  %v293_v62 = vmul.f32 %v1055_v52, %v266_v60  ;;  %v294_v63 = vmul.f32 %v1058_v53, %v265_v59  ;;  %v1168_v15 = vrot.slane %v825_v50, %v989_v13 }
  0x8c   :  { %v219_v7 = vpop.permute.xlu1 %218  ;;  %404 = vmatprep.subr.mxu0 %v293_v62  ;;  %475 = vmatprep.subr.mxu1 %v295_v61  ;;  %v217_v14 = vpop.permute.xlu0 %216 }
  0x8d   :  { %405 = vmatpush1.msra.mxu0 %v292_v6  ;;  %476 = vmatpush1.msra.mxu1 %v294_v63  ;;  %v227_v28 = vsel %vm224_vm3, %v217_v14, %v219_v7  ;;  %v1159_v63 = vrot.slane %v825_v50, %v983_v10 }
  0x8e   :  { %v252_v44 = vmul.f32 %v1101_v25, %v227_v28  ;;  %v1171_v28 = vrot.slane %v825_v50, %v985_v11 }
  0x90   :  { %v223_v29 = vpop.permute.xlu1 %222  ;;  %v221_v30 = vpop.permute.xlu0 %220 }
  0x91   :  { %v228_v32 = vsel %vm224_vm3, %v223_v29, %v217_v14  ;;  %v225_v33 = vsel %vm224_vm3, %v221_v30, %v223_v29  ;;  %v226_v38 = vsel %vm224_vm3, %v219_v7, %v221_v30  ;;  %v1165_v14 = vrot.slane %v825_v50, %v987_v12  ;;  %v824_v29 = vld [vmem:[%s1443_s5 + $0x1] ss:$8 sm:$0xf]  ;;  %v43_v50 = vld [vmem:[%s1443_s5] ss:$8 sm:$0xf] }
  0x92   :  { %v255_v40 = vmul.f32 %v1089_v21, %v228_v32  ;;  %v253_v41 = vmul.f32 %v1092_v22, %v226_v38  ;;  %v254_v42 = vmul.f32 %v1095_v23, %v225_v33 }
  0x94   :  { %v152_v47 = vpop.permute.xlu1 %151  ;;  %406 = vmatprep.subr.mxu0 %v253_v41  ;;  %477 = vmatprep.subr.mxu1 %v255_v40  ;;  %v150_v3 = vpop.permute.xlu0 %149 }
  0x95   :  { %v160_v48 = vsel %vm157_vm4, %v150_v3, %v152_v47  ;;  %407 = vmatpush1.msra.mxu0 %v252_v44  ;;  %478 = vmatpush1.msra.mxu1 %v254_v42 }
  0x96   :  { %v186_v2 = vmul.f32 %v1113_v31, %v160_v48  ;;  %408 = vmatprep.subr.mxu0 %v213_v39  ;;  %479 = vmatprep.subr.mxu1 %v215_v43  ;;  %v1187_v43 = vrot.slane %v824_v29, %v983_v10  ;;  %v1196_v48 = vrot.slane %v824_v29, %v989_v13 }
  0x97   :  { %409 = vmatpush1.msra.mxu0 %v212_v45  ;;  %480 = vmatpush1.msra.mxu1 %v214_v46 }
  0x98   :  { %v156_v55 = vpop.permute.xlu1 %155  ;;  %v154_v56 = vpop.permute.xlu0 %153  ;;  %410 = vmatprep.subr.mxu0 %v186_v2  ;;  %v1199_v2 = vrot.slane %v824_v29, %v985_v11 }
  0x99   :  { %v161_v57 = vsel %vm157_vm4, %v156_v55, %v150_v3  ;;  %v158_v58 = vsel %vm157_vm4, %v154_v56, %v156_v55  ;;  %v159_v59 = vsel %vm157_vm4, %v152_v47, %v154_v56  ;;  %v1193_v3 = vrot.slane %v824_v29, %v987_v12 }
  0x9a   :  { %v185_v60 = vmul.f32 %v1136_v49, %v161_v57  ;;  %v187_v61 = vmul.f32 %v1140_v1, %v159_v59  ;;  %v188_v62 = vmul.f32 %v1143_v0, %v158_v58 }
  0x9c   :  { %v112_v5 = vpop.permute.xlu1 %111  ;;  %481 = vmatprep.subr.mxu1 %v188_v62  ;;  %v110_v6 = vpop.permute.xlu0 %109  ;;  %411 = vmatpush1.msra.mxu0 %v185_v60 }
  0x9d   :  { %v120_v7 = vsel %vm117_vm5, %v110_v6, %v112_v5  ;;  %482 = vmatpush1.msra.mxu1 %v187_v61 }
  0x9e   :  { %v146_v8 = vmul.f32 %v1159_v63, %v120_v7 }
  0xa0   :  { %v116_v30 = vpop.permute.xlu1 %115  ;;  %v114_v32 = vpop.permute.xlu0 %113  ;;  %412 = vmatprep.subr.mxu0 %v146_v8 }
  0xa1   :  { %v121_v33 = vsel %vm117_vm5, %v116_v30, %v110_v6  ;;  %v118_v38 = vsel %vm117_vm5, %v114_v32, %v116_v30  ;;  %v119_v39 = vsel %vm117_vm5, %v112_v5, %v114_v32  ;;  %v1215_v5 = vrot.slane %v43_v50, %v983_v10 }
  0xa2   :  { %v145_v40 = vmul.f32 %v1165_v14, %v121_v33  ;;  %v147_v41 = vmul.f32 %v1168_v15, %v119_v39  ;;  %v148_v42 = vmul.f32 %v1171_v28, %v118_v38  ;;  %v1221_v30 = vrot.slane %v43_v50, %v987_v12 }
  0xa3   :  { %v1224_v32 = vrot.slane %v43_v50, %v989_v13  ;;  %v1227_v33 = vrot.slane %v43_v50, %v985_v11  ;;  %v27_v11 = vld [vmem:[%s1444_s1] sm:$0xff] }
  0xa4   :  { %v72_v44 = vpop.permute.xlu1 %71  ;;  %483 = vmatprep.subr.mxu1 %v148_v42  ;;  %v70_v45 = vpop.permute.xlu0 %69  ;;  %413 = vmatpush1.msra.mxu0 %v145_v40 }
  0xa5   :  { %v80_v46 = vsel %vm77_vm6, %v70_v45, %v72_v44  ;;  %484 = vmatpush1.msra.mxu1 %v147_v41 }
  0xa6   :  { %v106_v47 = vmul.f32 %v1187_v43, %v80_v46 }
  0xa8   :  { %v76_v55 = vpop.permute.xlu1 %75  ;;  %v74_v56 = vpop.permute.xlu0 %73  ;;  %414 = vmatprep.subr.mxu0 %v106_v47 }
  0xa9   :  { %v81_v57 = vsel %vm77_vm6, %v76_v55, %v70_v45  ;;  %v78_v58 = vsel %vm77_vm6, %v74_v56, %v76_v55  ;;  %v79_v59 = vsel %vm77_vm6, %v72_v44, %v74_v56 }
  0xaa   :  { %v105_v60 = vmul.f32 %v1193_v3, %v81_v57  ;;  %v107_v61 = vmul.f32 %v1196_v48, %v79_v59  ;;  %v108_v62 = vmul.f32 %v1199_v2, %v78_v58 }
  0xac   :  { %v31_v6 = vpop.permute.xlu1 %30  ;;  %485 = vmatprep.subr.mxu1 %v108_v62  ;;  %v29_v7 = vpop.permute.xlu0 %28  ;;  %415 = vmatpush1.msra.mxu0 %v105_v60  ;;  %v665_v62 = vld [vmem:[%s1445_s4] sm:$0xff] }
  0xad   :  { %v41_v8 = vsel %vm38_vm7, %v29_v7, %v31_v6  ;;  %486 = vmatpush1.msra.mxu1 %v107_v61 }
  0xae   :  { %v66_v29 = vmul.f32 %v1215_v5, %v41_v8 }
  0xb0   :  { %v35_v10 = vpop.permute.xlu1 %34  ;;  %v33_v38 = vpop.permute.xlu0 %32  ;;  %416 = vmatprep.subr.mxu0 %v66_v29 }
  0xb1   :  { %v42_v39 = vsel %vm38_vm7, %v35_v10, %v29_v7  ;;  %v39_v40 = vsel %vm38_vm7, %v33_v38, %v35_v10  ;;  %v40_v41 = vsel %vm38_vm7, %v31_v6, %v33_v38 }
  0xb2   :  { %v65_v12 = vmul.f32 %v1221_v30, %v42_v39  ;;  %v67_v13 = vmul.f32 %v1224_v32, %v40_v41  ;;  %v68_v42 = vmul.f32 %v1227_v33, %v39_v40 }
  0xb4   :  { %417 = vmatpush1.msra.mxu0 %v65_v12  ;;  %487 = vmatprep.subr.mxu1 %v68_v42 }
  0xb5   :  { %832 = vmatmul.mubr.msk.f32.vlgmr.msra.gmra.mxu0 %vm382_vm8, %v27_v11  ;;  %488 = vmatpush1.msra.mxu1 %v67_v13 }
  0xb6   :  { %833 = vmatmul.mubr.msk.f32.vlgmr.msra.gmra.mxu1 %vm382_vm8, %v27_v11  ;;  %738 = vmatprep.mubr.f32.mxu0 %v854_v4 }
  0xb7   :  { %809 = vmatprep.mubr.f32.mxu1 %v854_v4 }
  0xbd   :  { %v380_v44 = vpop.permute.xlu0 %379 }
 0x175   :  { %v452_v45 = vpop.f32.mrf.mxu0 }
 0x176   :  { %v453_v46 = vadd.f32 %v452_v45, %v380_v44  ;;  %v523_v47 = vpop.f32.mrf.mxu1 }
 0x177   :  { %v524_v50 = vadd.f32 %v523_v47, %v380_v44  ;;  %v454_v55 = vpop.f32.mrf.mxu0 }
 0x178   :  { %v1245_v56 = vmax.f32 %v453_v46, 0.0  ;;  %v455_v57 = vadd.f32 %v454_v55, %v380_v44  ;;  %v525_v59 = vpop.f32.mrf.mxu1 }
 0x179   :  { %v1247_v58 = vmax.f32 %v524_v50, 0.0  ;;  %v526_v4 = vadd.f32 %v525_v59, %v380_v44 }
 0x17a   :  { %649 = vrot.lane.b32.xlu1 %v1245_v56, %s847_s25  ;;  %v1253_v60 = vmax.f32 %v455_v57, 0.0 }
 0x17b   :  { %653 = vrot.lane.b32.xlu0 %v1247_v58, %s847_s25  ;;  %v1259_v61 = vmax.f32 %v526_v4, 0.0 }
 0x17e   :  { %651 = vrot.lane.b32.xlu1 %v1253_v60, %s847_s25 }
 0x17f   :  { %633 = vrot.lane.b32.xlu0 %v1245_v56, %s848_s30 }
 0x182   :  { %655 = vrot.lane.b32.xlu1 %v1259_v61, %s847_s25 }
 0x183   :  { %637 = vrot.lane.b32.xlu0 %v1247_v58, %s848_s30 }
 0x186   :  { %635 = vrot.lane.b32.xlu1 %v1253_v60, %s848_s30 }
 0x187   :  { %617 = vrot.lane.b32.xlu0 %v1245_v56, %s849_s0 }
 0x18a   :  { %639 = vrot.lane.b32.xlu1 %v1259_v61, %s848_s30 }
 0x18b   :  { %621 = vrot.lane.b32.xlu0 %v1247_v58, %s849_s0 }
 0x18e   :  { %619 = vrot.lane.b32.xlu1 %v1253_v60, %s849_s0 }
 0x18f   :  { %601 = vrot.lane.b32.xlu0 %v1245_v56, %s850_s7 }
 0x192   :  { %623 = vrot.lane.b32.xlu1 %v1259_v61, %s849_s0 }
 0x193   :  { %605 = vrot.lane.b32.xlu0 %v1247_v58, %s850_s7 }
 0x196   :  { %603 = vrot.lane.b32.xlu1 %v1253_v60, %s850_s7 }
 0x197   :  { %581 = vrot.lane.b32.xlu0 %v1245_v56, %s851_s8 }
 0x19a   :  { %607 = vrot.lane.b32.xlu1 %v1259_v61, %s850_s7 }
 0x19b   :  { %585 = vrot.lane.b32.xlu0 %v1247_v58, %s851_s8 }
 0x19e   :  { %583 = vrot.lane.b32.xlu1 %v1253_v60, %s851_s8 }
 0x19f   :  { %565 = vrot.lane.b32.xlu0 %v1245_v56, %s852_s9 }
 0x1a2   :  { %587 = vrot.lane.b32.xlu1 %v1259_v61, %s851_s8 }
 0x1a3   :  { %569 = vrot.lane.b32.xlu0 %v1247_v58, %s852_s9 }
 0x1a6   :  { %567 = vrot.lane.b32.xlu1 %v1253_v60, %s852_s9 }
 0x1a7   :  { %549 = vrot.lane.b32.xlu0 %v1245_v56, %s853_s10 }
 0x1aa   :  { %571 = vrot.lane.b32.xlu1 %v1259_v61, %s852_s9 }
 0x1ab   :  { %553 = vrot.lane.b32.xlu0 %v1247_v58, %s853_s10 }
 0x1ae   :  { %551 = vrot.lane.b32.xlu1 %v1253_v60, %s853_s10 }
 0x1af   :  { %533 = vrot.lane.b32.xlu0 %v1245_v56, %s856_s11 }
 0x1b2   :  { %555 = vrot.lane.b32.xlu1 %v1259_v61, %s853_s10 }
 0x1b3   :  { %537 = vrot.lane.b32.xlu0 %v1247_v58, %s856_s11 }
 0x1b6   :  { %535 = vrot.lane.b32.xlu1 %v1253_v60, %s856_s11 }
 0x1b7   :  { %668 = vperm.xlu0 %846, %v665_v62  }
 0x1ba   :  { %539 = vrot.lane.b32.xlu1 %v1259_v61, %s856_s11 }
 0x1ec   :  { %v650_v6 = vpop.permute.xlu1 %649 }
 0x1ed   :  { %v654_v7 = vpop.permute.xlu0 %653 }
 0x1f0   :  { %v652_v8 = vpop.permute.xlu1 %651 }
 0x1f1   :  { %v658_v29 = vsel %vm344_vm0, %v652_v8, %v654_v7  ;;  %v659_v10 = vsel %vm344_vm0, %v650_v6, %v652_v8  ;;  %v634_v38 = vpop.permute.xlu0 %633 }
 0x1f2   :  { %v661_v39 = vmul.f32 %v659_v10, %v1002_v19  ;;  %v662_v40 = vmul.f32 %v658_v29, %v996_v17 }
 0x1f4   :  { %688 = vmatprep.subr.mxu0 %v662_v40  ;;  %v656_v41 = vpop.permute.xlu1 %655 }
 0x1f5   :  { %v657_v12 = vsel %vm344_vm0, %v654_v7, %v656_v41  ;;  %v660_v13 = vsel %vm344_vm0, %v656_v41, %v650_v6  ;;  %v638_v42 = vpop.permute.xlu0 %637  ;;  %689 = vmatpush1.msra.mxu0 %v661_v39 }
 0x1f6   :  { %v663_v11 = vmul.f32 %v657_v12, %v1005_v20  ;;  %v664_v44 = vmul.f32 %v660_v13, %v999_v18 }
 0x1f8   :  { %759 = vmatprep.subr.mxu1 %v664_v44  ;;  %v636_v45 = vpop.permute.xlu1 %635 }
 0x1f9   :  { %v642_v19 = vsel %vm304_vm1, %v636_v45, %v638_v42  ;;  %v643_v17 = vsel %vm304_vm1, %v634_v38, %v636_v45  ;;  %v618_v46 = vpop.permute.xlu0 %617  ;;  %760 = vmatpush1.msra.mxu1 %v663_v11  ;;  %v597_v45 = vmul.f32 %v1245_v56, %v1104_v26 }
 0x1fa   :  { %v645_v47 = vmul.f32 %v643_v17, %v1033_v37  ;;  %v646_v50 = vmul.f32 %v642_v19, %v1027_v35 }
 0x1fc   :  { %690 = vmatprep.subr.mxu0 %v646_v50  ;;  %v640_v55 = vpop.permute.xlu1 %639 }
 0x1fd   :  { %v641_v20 = vsel %vm304_vm1, %v638_v42, %v640_v55  ;;  %v644_v18 = vsel %vm304_vm1, %v640_v55, %v634_v38  ;;  %v622_v57 = vpop.permute.xlu0 %621  ;;  %691 = vmatpush1.msra.mxu0 %v645_v47 }
 0x1fe   :  { %v647_v59 = vmul.f32 %v641_v20, %v1030_v36  ;;  %v648_v4 = vmul.f32 %v644_v18, %v1024_v34 }
 0x200   :  { %761 = vmatprep.subr.mxu1 %v648_v4  ;;  %v620_v62 = vpop.permute.xlu1 %619 }
 0x201   :  { %v626_v37 = vsel %vm264_vm2, %v620_v62, %v622_v57  ;;  %v627_v35 = vsel %vm264_vm2, %v618_v46, %v620_v62  ;;  %v602_v6 = vpop.permute.xlu0 %601  ;;  %762 = vmatpush1.msra.mxu1 %v647_v59 }
 0x202   :  { %v629_v7 = vmul.f32 %v627_v35, %v1061_v54  ;;  %v630_v8 = vmul.f32 %v626_v37, %v1055_v52 }
 0x204   :  { %692 = vmatprep.subr.mxu0 %v630_v8  ;;  %v624_v29 = vpop.permute.xlu1 %623 }
 0x205   :  { %v625_v36 = vsel %vm264_vm2, %v622_v57, %v624_v29  ;;  %v628_v34 = vsel %vm264_vm2, %v624_v29, %v618_v46  ;;  %v606_v10 = vpop.permute.xlu0 %605  ;;  %693 = vmatpush1.msra.mxu0 %v629_v7  ;;  %v599_v46 = vmul.f32 %v1247_v58, %v1107_v27 }
 0x206   :  { %v631_v38 = vmul.f32 %v625_v36, %v1058_v53  ;;  %v632_v39 = vmul.f32 %v628_v34, %v1052_v51  ;;  %v598_v53 = vmul.f32 %v1253_v60, %v1086_v16  ;;  %v600_v16 = vmul.f32 %v1259_v61, %v1098_v24 }
 0x208   :  { %763 = vmatprep.subr.mxu1 %v632_v39  ;;  %v604_v40 = vpop.permute.xlu1 %603 }
 0x209   :  { %v610_v54 = vsel %vm224_vm3, %v604_v40, %v606_v10  ;;  %v611_v52 = vsel %vm224_vm3, %v602_v6, %v604_v40  ;;  %v582_v41 = vpop.permute.xlu0 %581  ;;  %764 = vmatpush1.msra.mxu1 %v631_v38 }
 0x20a   :  { %v613_v12 = vmul.f32 %v611_v52, %v1101_v25  ;;  %v614_v13 = vmul.f32 %v610_v54, %v1092_v22 }
 0x20c   :  { %694 = vmatprep.subr.mxu0 %v614_v13  ;;  %v608_v42 = vpop.permute.xlu1 %607 }
 0x20d   :  { %v609_v51 = vsel %vm224_vm3, %v606_v10, %v608_v42  ;;  %v612_v11 = vsel %vm224_vm3, %v608_v42, %v602_v6  ;;  %v586_v44 = vpop.permute.xlu0 %585  ;;  %695 = vmatpush1.msra.mxu0 %v613_v12 }
 0x20e   :  { %v615_v25 = vmul.f32 %v609_v51, %v1095_v23  ;;  %v616_v22 = vmul.f32 %v612_v11, %v1089_v21  ;;  %696 = vmatprep.subr.mxu0 %v598_v53 }
 0x20f   :  { %697 = vmatpush1.msra.mxu0 %v597_v45 }
 0x210   :  { %765 = vmatprep.subr.mxu1 %v616_v22  ;;  %v584_v19 = vpop.permute.xlu1 %583 }
 0x211   :  { %v591_v60 = vsel %vm157_vm4, %v582_v41, %v584_v19  ;;  %v566_v17 = vpop.permute.xlu0 %565  ;;  %766 = vmatpush1.msra.mxu1 %v615_v25  ;;  %v590_v21 = vsel %vm157_vm4, %v584_v19, %v586_v44 }
 0x212   :  { %v594_v26 = vmul.f32 %v591_v60, %v1113_v31  ;;  %767 = vmatprep.subr.mxu1 %v600_v16  ;;  %v595_v31 = vmul.f32 %v590_v21, %v1140_v1 }
 0x213   :  { %768 = vmatpush1.msra.mxu1 %v599_v46 }
 0x214   :  { %v588_v23 = vpop.permute.xlu1 %587  ;;  %698 = vmatprep.subr.mxu0 %v594_v26 }
 0x215   :  { %v589_v24 = vsel %vm157_vm4, %v586_v44, %v588_v23  ;;  %v592_v56 = vsel %vm157_vm4, %v588_v23, %v582_v41  ;;  %v570_v61 = vpop.permute.xlu0 %569 }
 0x216   :  { %v593_v47 = vmul.f32 %v592_v56, %v1136_v49  ;;  %v596_v27 = vmul.f32 %v589_v24, %v1143_v0 }
 0x218   :  { %769 = vmatprep.subr.mxu1 %v596_v27  ;;  %v568_v58 = vpop.permute.xlu1 %567  ;;  %699 = vmatpush1.msra.mxu0 %v593_v47 }
 0x219   :  { %v575_v50 = vsel %vm117_vm5, %v566_v17, %v568_v58  ;;  %v550_v55 = vpop.permute.xlu0 %549  ;;  %770 = vmatpush1.msra.mxu1 %v595_v31  ;;  %v574_v18 = vsel %vm117_vm5, %v568_v58, %v570_v61 }
 0x21a   :  { %v578_v20 = vmul.f32 %v575_v50, %v1159_v63  ;;  %v579_v4 = vmul.f32 %v574_v18, %v1168_v15 }
 0x21c   :  { %v572_v57 = vpop.permute.xlu1 %571  ;;  %700 = vmatprep.subr.mxu0 %v578_v20 }
 0x21d   :  { %v573_v49 = vsel %vm117_vm5, %v570_v61, %v572_v57  ;;  %v576_v1 = vsel %vm117_vm5, %v572_v57, %v566_v17  ;;  %v554_v62 = vpop.permute.xlu0 %553 }
 0x21e   :  { %v577_v0 = vmul.f32 %v576_v1, %v1165_v14  ;;  %v580_v59 = vmul.f32 %v573_v49, %v1171_v28 }
 0x220   :  { %771 = vmatprep.subr.mxu1 %v580_v59  ;;  %v552_v63 = vpop.permute.xlu1 %551  ;;  %701 = vmatpush1.msra.mxu0 %v577_v0 }
 0x221   :  { %v559_v37 = vsel %vm77_vm6, %v550_v55, %v552_v63  ;;  %772 = vmatpush1.msra.mxu1 %v579_v4  ;;  %v558_v6 = vsel %vm77_vm6, %v552_v63, %v554_v62  ;;  %v534_v14 = vpop.permute.xlu0 %533 }
 0x222   :  { %v562_v35 = vmul.f32 %v559_v37, %v1187_v43  ;;  %v563_v36 = vmul.f32 %v558_v6, %v1196_v48 }
 0x224   :  { %v556_v7 = vpop.permute.xlu1 %555  ;;  %702 = vmatprep.subr.mxu0 %v562_v35 }
 0x225   :  { %v557_v28 = vsel %vm77_vm6, %v554_v62, %v556_v7  ;;  %v560_v15 = vsel %vm77_vm6, %v556_v7, %v550_v55  ;;  %v538_v38 = vpop.permute.xlu0 %537 }
 0x226   :  { %v561_v8 = vmul.f32 %v560_v15, %v1193_v3  ;;  %v564_v29 = vmul.f32 %v557_v28, %v1199_v2 }
 0x228   :  { %773 = vmatprep.subr.mxu1 %v564_v29  ;;  %v536_v43 = vpop.permute.xlu1 %535  ;;  %703 = vmatpush1.msra.mxu0 %v561_v8 }
 0x229   :  { %v543_v34 = vsel %vm38_vm7, %v534_v14, %v536_v43  ;;  %774 = vmatpush1.msra.mxu1 %v563_v36  ;;  %v542_v39 = vsel %vm38_vm7, %v536_v43, %v538_v38 }
 0x22a   :  { %v546_v10 = vmul.f32 %v543_v34, %v1215_v5  ;;  %v532_v5 = vld [vmem:[%s1446_s3] sm:$0xff]  ;;  %v547_v52 = vmul.f32 %v542_v39, %v1224_v32 }
 0x22c   :  { %v540_v40 = vpop.permute.xlu1 %539  ;;  %704 = vmatprep.subr.mxu0 %v546_v10 }
 0x22d   :  { %v541_v3 = vsel %vm38_vm7, %v538_v38, %v540_v40  ;;  %v544_v48 = vsel %vm38_vm7, %v540_v40, %v534_v14 }
 0x22e   :  { %v545_v2 = vmul.f32 %v544_v48, %v1221_v30  ;;  %v548_v54 = vmul.f32 %v541_v3, %v1227_v33 }
 0x230   :  { %705 = vmatpush1.msra.mxu0 %v545_v2  ;;  %775 = vmatprep.subr.mxu1 %v548_v54 }
 0x231   :  { %834 = vmatmul.mubr.msk.f32.vlgmr.msra.gmra.mxu0 %vm382_vm8, %v532_v5  ;;  %776 = vmatpush1.msra.mxu1 %v547_v52 }
 0x232   :  { %835 = vmatmul.mubr.msk.f32.vlgmr.msra.gmra.mxu1 %vm382_vm8, %v532_v5  ;;  %v669_v41 = vpop.permute.xlu0 %668 }
 0x2f1   :  { %v740_v9 = vpop.f32.mrf.mxu0 }
 0x2f2   :  { %v741_v12 = vadd.f32 %v740_v9, %v669_v41  ;;  %v811_v13 = vpop.f32.mrf.mxu1 }
 0x2f3   :  { %v812_v30 = vadd.f32 %v811_v13, %v669_v41  ;;  %v742_v42 = vpop.f32.mrf.mxu0 }
 0x2f4   :  { %816 = vst [vmem:[%s1447_s6] sm:$0xff] %v741_v12  ;;  %v743_v33 = vadd.f32 %v742_v42, %v669_v41  ;;  %v813_v53 = vpop.f32.mrf.mxu1 }
 0x2f5   :  { %818 = vst [vmem:[%s1447_s6 + $0x10] sm:$0xff] %v812_v30  ;;  %v814_v32 = vadd.f32 %v813_v53, %v669_v41 }
 0x2f6   :  { %817 = vst [vmem:[%s1447_s6 + $0x8] sm:$0xff] %v743_v33 }
 0x2f7   :  { %819 = vst [vmem:[%s1447_s6 + $0x18] sm:$0xff] %v814_v32 }

</bundles_post_ra>
